<compile_context>
chip_gen: v6e
topology: v6e:2x2x1
jax: 0.10.0
libtpu: 0.0.40
codegen_flags: <defaults>
</compile_context>

<pallas_src>
import functools
import math

import jax
import jax.numpy as jnp
from jax.experimental import pallas as pl
from jax.experimental.pallas import tpu as pltpu


def self_attention_kernel(x_ref, wqt_ref, bq_ref, o_ref, *, seq_len):
    rows, H = x_ref.shape                     # rows = Bt * S
    S = seq_len
    Bt = rows // S

    # Single fused projection for all Bt*S rows (bf16 MXU, f32 accumulate).
    # Q = K = V = x @ Wq^T + bq   (the reference applies self.query 3 times).
    q2d = jnp.dot(x_ref[...], wqt_ref[...],
                  preferred_element_type=jnp.float32) + bq_ref[...]      # (rows, H) f32

    # Per-batch view: leading-dim split only, minor dims untouched (no relayout).
    q = q2d.reshape(Bt, S, H)                                            # f32
    q_mxu = q.astype(jnp.bfloat16)                                       # MXU operands only

    # scores = Q @ K^T / sqrt(hidden_size)
    scale = jnp.float32(1.0 / math.sqrt(H))
    scores = jnp.einsum("bqh,bkh->bqk", q_mxu, q_mxu,
                        preferred_element_type=jnp.float32) * scale      # (Bt,S,S) f32

    # Numerically-stable softmax kept in f32 (v5e-safe); normalization is
    # deferred past the PV matmul so only the (S, H) context gets scaled.
    m = jnp.max(scores, axis=-1, keepdims=True)
    e = jnp.exp(scores - m)                                              # (Bt,S,S) f32
    l = jnp.sum(e, axis=-1, keepdims=True)                               # (Bt,S,1) f32

    ctx = jnp.einsum("bqk,bkh->bqh", e.astype(jnp.bfloat16), q_mxu,
                     preferred_element_type=jnp.float32)                 # (Bt,S,H) f32
    out = ctx * pl.reciprocal(l, approx=True)                            # EUP reciprocal

    # Leading-dim merge back to the 2-D out block (minor dims untouched).
    o_ref[...] = out.reshape(rows, H).astype(o_ref.dtype)


def self_attention(particles, wq, bq, *, num_batch_blocks=1):
    """particles: (B, S, H) f32; wq: (H, H) PyTorch (out, in); bq: (H,).

    num_batch_blocks: grid steps over the batch axis.
      1  -> fully collapsed grid (best at small sizes on every generation).
      2+ -> parallel batch blocks; only worth it when per-block compute
            clearly exceeds the ~0.35 us per-grid-step overhead (scaled
            shapes on v7x's two TensorCores).
    """
    B, S, H = particles.shape
    num_batch_blocks = max(1, min(num_batch_blocks, B))
    assert B % num_batch_blocks == 0, "B must be divisible by num_batch_blocks"
    Bt = B // num_batch_blocks
    rows_per_block = Bt * S
    # Blocked second-minor dim must be a multiple of 8 unless the block covers
    # the whole array (num_batch_blocks == 1).
    assert num_batch_blocks == 1 or rows_per_block % 8 == 0, \
        "Bt * S must be a multiple of 8 when splitting the batch axis"

    # One-time wrapper-side prep (cheap XLA ops, hoisted out of the kernel):
    #   * flatten to 2-D so the kernel never reshapes a loaded ref,
    #   * transpose the weight to (in, out) so the kernel does x @ wqt,
    #   * cast MXU operands to bf16 (also halves the input DMA bytes).
    x2d = particles.reshape(B * S, H).astype(jnp.bfloat16)
    wqt = wq.T.astype(jnp.bfloat16)
    bq2d = bq.reshape(1, H).astype(jnp.float32)

    # VMEM limit derived from actual block bytes with headroom, capped at
    # 48 MiB so v7x (64 MiB physical per TensorCore) keeps compiler slack;
    # v5e/v6e (128 MiB) are comfortably under their physical limit too.
    block_bytes = (
        2 * rows_per_block * H * 2      # x block, double-buffered, bf16
        + 2 * rows_per_block * H * 4    # out block, double-buffered, f32
        + H * H * 2 + H * 4             # weight + bias
        + 2 * Bt * S * S * 4            # scores + exp temps (f32)
        + 2 * rows_per_block * H * 4    # q / ctx temps (f32)
    )
    vmem_limit = int(min(48 * 1024 * 1024,
                         max(16 * 1024 * 1024, 4 * block_bytes)))

    out2d = pl.pallas_call(
        functools.partial(self_attention_kernel, seq_len=S),
        out_shape=jax.ShapeDtypeStruct((B * S, H), particles.dtype),
        grid_spec=pltpu.PrefetchScalarGridSpec(
            num_scalar_prefetch=0,
            grid=(num_batch_blocks,),
            in_specs=[
                pl.BlockSpec((rows_per_block, H), lambda b: (b, 0)),  # particles (bf16)
                pl.BlockSpec((H, H), lambda b: (0, 0)),               # pre-transposed weight
                pl.BlockSpec((1, H), lambda b: (0, 0)),               # bias
            ],
            out_specs=pl.BlockSpec((rows_per_block, H), lambda b: (b, 0)),
        ),
        compiler_params=pltpu.CompilerParams(
            dimension_semantics=("parallel",),
            vmem_limit_bytes=vmem_limit,
        ),
    )(x2d, wqt, bq2d)
    return out2d.reshape(B, S, H)


def self_attention_ref(particles, wq, bq):
    """Plain-JAX f32 reference mirroring the PyTorch forward."""
    q = jnp.einsum("bsh,oh->bso", particles, wq) + bq
    scores = jnp.einsum("bqh,bkh->bqk", q, q) / math.sqrt(q.shape[-1])
    probs = jax.nn.softmax(scores, axis=-1)
    return jnp.einsum("bqk,bkh->bqh", probs, q)


if __name__ == "__main__":
    B, S, H = 2, 8, 32  # batch, num_particles, hidden_size

    key = jax.random.PRNGKey(0)
    kx, kw, kb = jax.random.split(key, 3)

    particles = jax.random.normal(kx, (B, S, H), dtype=jnp.float32)

    # Deterministic init mimicking nn.Linear's uniform(-1/sqrt(H), 1/sqrt(H))
    bound = 1.0 / math.sqrt(H)
    wq = jax.random.uniform(kw, (H, H), minval=-bound, maxval=bound,
                            dtype=jnp.float32)
    bq = jax.random.uniform(kb, (H,), minval=-bound, maxval=bound,
                            dtype=jnp.float32)

    ref = self_attention_ref(particles, wq, bq)

    # Fully collapsed grid (default, one step processes the whole batch).
    out = jax.block_until_ready(self_attention(particles, wq, bq,
                                               num_batch_blocks=1))
    assert out.shape == (B, S, H)
    # bf16 MXU operands + approx reciprocal -> looser tolerance than pure f32.
    assert jnp.allclose(out, ref, atol=3e-2, rtol=3e-2), "mismatch (collapsed grid)"

    # Parallel batch blocks (exercises the multi-step / v7x two-core path).
    out2 = jax.block_until_ready(self_attention(particles, wq, bq,
                                                num_batch_blocks=2))
    assert jnp.allclose(out2, ref, atol=3e-2, rtol=3e-2), "mismatch (parallel grid)"

    print("KERNEL_OK")
</pallas_src>

<mosaic_0001>
module attributes {stable_mosaic.version = 11 : i64} {
  func.func @self_attention_kernel(%arg0: i32, %arg1: memref<16x32xbf16, #tpu.memory_space<vmem>>, %arg2: memref<32x32xbf16, #tpu.memory_space<vmem>>, %arg3: memref<1x32xf32, #tpu.memory_space<vmem>>, %arg4: memref<16x32xf32, #tpu.memory_space<vmem>>) attributes {dimension_semantics = [#tpu.dimension_semantics<parallel>], iteration_bounds = array<i64: 1>, scalar_prefetch = 0 : i64, scratch_operands = 0 : i64, tpu.core_type = #tpu.core_type<tc>, window_params = [{transform_indices = @transform_0, window_bounds = array<i64: 16, 32>}, {pipeline_mode = #tpu.pipeline_mode<synchronous>, transform_indices = @transform_1, window_bounds = array<i64: 32, 32>}, {pipeline_mode = #tpu.pipeline_mode<synchronous>, transform_indices = @transform_2, window_bounds = array<i64: 1, 32>}, {transform_indices = @transform_3, window_bounds = array<i64: 16, 32>}]} {
    %c0 = arith.constant 0 : index
    %c0_0 = arith.constant 0 : index
    %0 = vector.load %arg1[%c0, %c0_0] : memref<16x32xbf16, #tpu.memory_space<vmem>>, vector<16x32xbf16>
    %c0_1 = arith.constant 0 : index
    %c0_2 = arith.constant 0 : index
    %1 = vector.load %arg2[%c0_1, %c0_2] : memref<32x32xbf16, #tpu.memory_space<vmem>>, vector<32x32xbf16>
    %cst = arith.constant dense<0.000000e+00> : vector<16x32xf32>
    %2 = tpu.matmul %0, %1, %cst {dimension_numbers = #tpu.dot_dimension_numbers<[1], [0], [0], [1], [0, 0, 1, 1], [], []>} : vector<16x32xbf16>, vector<32x32xbf16>, vector<16x32xf32> -> vector<16x32xf32>
    %c0_3 = arith.constant 0 : index
    %c0_4 = arith.constant 0 : index
    %3 = vector.load %arg3[%c0_3, %c0_4] : memref<1x32xf32, #tpu.memory_space<vmem>>, vector<1x32xf32>
    %4 = vector.broadcast %3 : vector<1x32xf32> to vector<16x32xf32>
    %5 = arith.addf %2, %4 : vector<16x32xf32>
    %6 = vector.shape_cast %5 : vector<16x32xf32> to vector<2x8x32xf32>
    %7 = arith.truncf %6 : vector<2x8x32xf32> to vector<2x8x32xbf16>
    "tpu.trace_start"() <{level = 10 : i32, message = "bqh,bkh->bqk"}> : () -> ()
    %cst_5 = arith.constant dense<0.000000e+00> : vector<2x8x8xf32>
    %8 = tpu.matmul %7, %7, %cst_5 {dimension_numbers = #tpu.dot_dimension_numbers<[2], [2], [1], [1], [0, 0, 0, 1, 1, 1], [0], [0]>} : vector<2x8x32xbf16>, vector<2x8x32xbf16>, vector<2x8x8xf32> -> vector<2x8x8xf32>
    "tpu.trace_stop"() : () -> ()
    %cst_6 = arith.constant 0.176776692 : f32
    %9 = vector.broadcast %cst_6 : f32 to vector<2x8x8xf32>
    %10 = arith.mulf %8, %9 : vector<2x8x8xf32>
    %cst_7 = arith.constant dense<0xFF800000> : vector<2x8xf32>
    %11 = vector.multi_reduction <maximumf>, %10, %cst_7 [2] : vector<2x8x8xf32> to vector<2x8xf32>
    %12 = vector.shape_cast %11 : vector<2x8xf32> to vector<2x8x1xf32>
    %13 = vector.broadcast %12 : vector<2x8x1xf32> to vector<2x8x8xf32>
    %14 = arith.subf %10, %13 : vector<2x8x8xf32>
    %15 = math.exp %14 : vector<2x8x8xf32>
    %cst_8 = arith.constant dense<0.000000e+00> : vector<2x8xf32>
    %16 = vector.multi_reduction <add>, %15, %cst_8 [2] : vector<2x8x8xf32> to vector<2x8xf32>
    %17 = vector.shape_cast %16 : vector<2x8xf32> to vector<2x8x1xf32>
    %18 = arith.truncf %15 : vector<2x8x8xf32> to vector<2x8x8xbf16>
    "tpu.trace_start"() <{level = 10 : i32, message = "bqk,bkh->bqh"}> : () -> ()
    %cst_9 = arith.constant dense<0.000000e+00> : vector<2x8x32xf32>
    %19 = tpu.matmul %18, %7, %cst_9 {dimension_numbers = #tpu.dot_dimension_numbers<[2], [1], [1], [2], [0, 0, 0, 1, 1, 2], [0], [0]>} : vector<2x8x8xbf16>, vector<2x8x32xbf16>, vector<2x8x32xf32> -> vector<2x8x32xf32>
    "tpu.trace_stop"() : () -> ()
    %20 = tpu.reciprocal %17 {approx = true} : vector<2x8x1xf32> -> vector<2x8x1xf32>
    %21 = vector.broadcast %20 : vector<2x8x1xf32> to vector<2x8x32xf32>
    %22 = arith.mulf %19, %21 : vector<2x8x32xf32>
    %23 = vector.shape_cast %22 : vector<2x8x32xf32> to vector<16x32xf32>
    %c0_10 = arith.constant 0 : index
    %c0_11 = arith.constant 0 : index
    %24 = vector.load %arg4[%c0_10, %c0_11] : memref<16x32xf32, #tpu.memory_space<vmem>>, vector<16x32xf32>
    tpu.vector_store %arg4[%c0_10, %c0_11], %23 {strides = array<i32>} : memref<16x32xf32, #tpu.memory_space<vmem>>, vector<16x32xf32>,
    return
  }
  func.func @transform_0(%arg0: i32) -> (i32, i32) {
    %c0_i32 = arith.constant 0 : i32
    %c0_i32_0 = arith.constant 0 : i32
    return %arg0, %c0_i32 : i32, i32
  }
  func.func @transform_1(%arg0: i32) -> (i32, i32) {
    %c0_i32 = arith.constant 0 : i32
    %c0_i32_0 = arith.constant 0 : i32
    %c0_i32_1 = arith.constant 0 : i32
    return %c0_i32, %c0_i32_0 : i32, i32
  }
  func.func @transform_2(%arg0: i32) -> (i32, i32) {
    %c0_i32 = arith.constant 0 : i32
    %c0_i32_0 = arith.constant 0 : i32
    %c0_i32_1 = arith.constant 0 : i32
    return %c0_i32, %c0_i32_0 : i32, i32
  }
  func.func @transform_3(%arg0: i32) -> (i32, i32) {
    %c0_i32 = arith.constant 0 : i32
    %c0_i32_0 = arith.constant 0 : i32
    return %arg0, %c0_i32 : i32, i32
  }
}

</mosaic_0001>

<bundles_post_ra>
// kernel: tpu_custom_call.1
= control target key start
LH: loop header
LB: loop body
LE: loop exit
PB: predicated region body
PF: predicated region fallthrough
CT: control target
= control target key end

     0   :  { %8 = vsyncpa [#allocation3], 0  ;;  %s542_s0 = inlined_call_operand.hbm [shape: bf16[16,32], index: 0, kind: input, shape index: {}]   ;;  %s543_s1 = inlined_call_operand.hbm [shape: bf16[32,32], index: 1, kind: input, shape index: {}]   ;;  %s544_s2 = inlined_call_operand.vmem [shape: f32[1,32], index: 2, kind: input, shape index: {}]   ;;  %s545_s3 = inlined_call_operand.hbm [shape: f32[16,32], index: 3, kind: output, shape index: {}]  }
   0x1   :  { %9 = vsyncpa [#allocation6], 0 }
   0x2   :  { %10 = vsyncpa [#allocation4], 0  ;;  %s483_s12 = smov [#allocation2]  }
   0x3   :  { %s16_s13 = sshll.u32 %s483_s12, 4  ;;  %s17_s13 = int_to_ptr.vmem [resolvable:$true] %s16_s13 }
   0x4   :  { %s425_s14 = scalar_lea.vmem %s17_s13, 128  ;;  %p430_p1 = scmp.lt.s32.totalorder %s17_s13, %s17_s13 }
   0x5   :  { %p426_p0 = scmp.ne.s32.totalorder %s17_s13, %s425_s14  ;;  %p431_p2 = scmp.lt.s32.totalorder %s425_s14, %s425_s14 }
   0x7   :  { %p432_p3 = por %p431_p2, %p430_p1 }
   0x9   :  { %p433_p4 = pnand %p432_p3, %p426_p0 }
   0xb   :  { %436 = shalt.err (!%p433_p4)
}
   0xc   :  { %s484_s15 = smov 64   ;;  %s485_s16 = smov 4  }
   0xd   :  { %22 = dma.hbm_to_vmem [thread:$0]  %s542_s0, 128, %s17_s13, [#allocation3], %s484_s15, %s484_s15, %s485_s16  }
   0xe   :  { %s486_s19 = smov [#allocation5]  }
   0xf   :  { %s28_s20 = sshll.u32 %s486_s19, 4  ;;  %s29_s20 = int_to_ptr.vmem [resolvable:$true] %s28_s20 }
  0x10   :  { %s445_s21 = scalar_lea.vmem %s29_s20, 256  ;;  %p450_p6 = scmp.lt.s32.totalorder %s29_s20, %s29_s20 }
  0x11   :  { %p446_p5 = scmp.ne.s32.totalorder %s29_s20, %s445_s21  ;;  %p451_p7 = scmp.lt.s32.totalorder %s445_s21, %s445_s21 }
  0x13   :  { %p452_p8 = por %p451_p7, %p450_p6 }
  0x15   :  { %p453_p9 = pnand %p452_p8, %p446_p5 }
  0x17   :  { %456 = shalt.err (!%p453_p9)
}
  0x18   :  { %34 = dma.hbm_to_vmem [thread:$0]  %s543_s1, 256, %s29_s20, [#allocation6], %s484_s15, %s484_s15, %s485_s16  }
  0x19   :  { %477 = dma.done.wait [#allocation3], 128  }
  0x1a   :  { %478 = vsyncadd [#allocation3], 4294967168 }
  0x1b   :  { %479 = dma.done.wait [#allocation6], 256  }
  0x1c   :  { %480 = vsyncadd [#allocation6], 4294967040  ;;  %v487_v0 = vmov 0.0   ;;  %vm488_vm0 = vmmov 0   ;;  %v406_v1 = vld [vmem:[#allocation5 + $0x8] sm:$0xff]   ;;  %v407_v2 = vld [vmem:[#allocation5] sm:$0xff]  }
  0x1d   :  { %365 = vmatprep.subr.bf16.mxu0 %v487_v0  ;;  %369 = vmatprep.mubr.msk.bf16.mxu0 %vm488_vm0, %v487_v0  ;;  %v408_v3 = vld [vmem:[#allocation2] sm:$0xff]   ;;  %vm74_vm1 = vcmask 261120   ;;  %vm233_vm2 = vcmask 1043456   ;;  %vm209_vm3 = vcmask 64512  }
  0x1e   :  { %373 = vmatprep.subr.bf16.mxu1 %v487_v0  ;;  %375 = vmatprep.mubr.msk.bf16.mxu1 %vm488_vm0, %v487_v0  ;;  %v345_v4 = vld [vmem:[%s544_s2] ss:$0 sm:$0xff]  ;;  %s489_s2 = smov [#allocation7]  }
  0x1f   :  { %366 = vmatpush3.bf16.msra.mxu0 %v406_v1  ;;  %s332_s24 = sshll.u32 %s489_s2, 4  ;;  %s333_s24 = int_to_ptr.vmem [resolvable:$true] %s332_s24 }
  0x20   :  { %367 = vmatprep.subr.bf16.mxu0 %v487_v0  ;;  %s457_s25 = scalar_lea.vmem %s333_s24, 256  ;;  %p462_p11 = scmp.lt.s32.totalorder %s333_s24, %s333_s24 }
  0x21   :  { %p458_p10 = scmp.ne.s32.totalorder %s333_s24, %s457_s25  ;;  %p463_p12 = scmp.lt.s32.totalorder %s457_s25, %s457_s25 }
  0x23   :  { %368 = vmatpush3.bf16.msra.mxu0 %v407_v2  ;;  %p464_p13 = por %p463_p12, %p462_p11 }
  0x24   :  { %379 = vmatprep.subr.bf16.mxu0 %v487_v0 }
  0x25   :  { %p465_p0 = pnand %p464_p13, %p458_p10 }
  0x26   :  { %370 = vmatmul.mubr.msk.bf16.vlgmr.msra.gmra.mxu0 %vm74_vm1, %v408_v3 }
  0x27   :  { %381 = vmatprep.mubr.msk.bf16.mxu0 %vm488_vm0, %v487_v0 }
  0xe6   :  { %v112_v5 = vpop.f32.mrf.mxu0 }
  0xe7   :  { %v113_v6 = vadd.f32 %v345_v4, %v112_v5 }
  0xe8   :  { %v371_v7 = vpop.f32.mrf.mxu0 }
  0xe9   :  { %v119_v8 = vpack.c.bf16 %v113_v6, %v113_v6 }
  0xea   :  { %v115_v9 = vpop.f32.mrf.mxu0 }
  0xeb   :  { %v116_v10 = vadd.f32 %v345_v4, %v115_v9  ;;  %v122_v11 = vsel %vm74_vm1, %v119_v8, 0  ;;  %v234_v15 = vsel %vm233_vm2, %v119_v8, 0 }
  0xec   :  { %v372_v12 = vpop.f32.mrf.mxu0  ;;  %374 = vmatpush3.bf16.xpose.msra.mxu1 %v122_v11 }
  0xed   :  { %v120_v13 = vpack.c.bf16 %v116_v10, %v116_v10  ;;  %385 = vmatprep.subr.bf16.mxu1 %v487_v0 }
  0xef   :  { %v165_v14 = vsel %vm74_vm1, %v120_v13, 0  ;;  %v279_v16 = vsel %vm233_vm2, %v120_v13, 0 }
  0xf0   :  { %380 = vmatpush3.bf16.xpose.msra.mxu0 %v165_v14 }
  0xf1   :  { %391 = vmatprep.subr.bf16.mxu0 %v487_v0 }
  0xf3   :  { %376 = vmatmul.mubr.msk.bf16.vlgmr.msra.gmra.mxu1 %vm74_vm1, %v119_v8 }
  0xf4   :  { %386 = vmatpush3.bf16.msra.mxu1 %v234_v15  ;;  %387 = vmatprep.mubr.msk.bf16.mxu1 %vm488_vm0, %v487_v0 }
  0xf7   :  { %382 = vmatmul.mubr.msk.bf16.vlgmr.msra.gmra.mxu0 %vm74_vm1, %v120_v13 }
  0xf8   :  { %392 = vmatpush3.bf16.msra.mxu0 %v279_v16  ;;  %393 = vmatprep.mubr.msk.bf16.mxu0 %vm488_vm0, %v487_v0 }
 0x1b3   :  { %v158_v17 = vpop.f32.mrf.mxu1 }
 0x1b4   :  { %v207_v18 = vmul.f32 0.17677669, %v158_v17 }
 0x1b5   :  { %v377_v19 = vpop.f32.mrf.mxu1 }
 0x1b6   :  { %v210_v20 = vsel %vm209_vm3, %v207_v18, -inf }
 0x1b7   :  { %211 = vmax.xlane.f32.xlu0 %v210_v20  ;;  %v161_v21 = vpop.f32.mrf.mxu1  ;;  %v201_v22 = vpop.f32.mrf.mxu0 }
 0x1b8   :  { %v208_v23 = vmul.f32 0.17677669, %v201_v22 }
 0x1b9   :  { %v378_v24 = vpop.f32.mrf.mxu1  ;;  %v383_v25 = vpop.f32.mrf.mxu0 }
 0x1ba   :  { %v213_v26 = vsel %vm209_vm3, %v208_v23, -inf }
 0x1bb   :  { %214 = vmax.xlane.f32.xlu0 %v213_v26  ;;  %v204_v27 = vpop.f32.mrf.mxu0 }
 0x1bd   :  { %v384_v28 = vpop.f32.mrf.mxu0 }
 0x240   :  { %v212_v29 = vpop.xlane.xlu0 %211 }
 0x241   :  { %v216_v30 = vsub.f32 %v207_v18, %v212_v29 }
 0x243   :  { %v218_v31 = vmul.f32 1.442695, %v216_v30 }
 0x244   :  { %v215_v32 = vpop.xlane.xlu0 %214 }
 0x245   :  { %409 = vpow2.f32 %v218_v31  ;;  %v217_v33 = vsub.f32 %v208_v23, %v215_v32 }
 0x247   :  { %v220_v34 = vmul.f32 1.442695, %v217_v33 }
 0x249   :  { %411 = vpow2.f32 %v220_v34 }
 0x252   :  { %v410_v35 = vpop.eup %409 }
 0x253   :  { %v222_v36 = vsel %vm209_vm3, %v410_v35, 0.0  ;;  %v228_v37 = vpack.c.bf16 %v410_v35, %v410_v35 }
 0x254   :  { %223 = vadd.xlane.f32.xlu1 %v222_v36 }
 0x255   :  { %388 = vmatmul.mubr.msk.bf16.vlgmr.msra.gmra.mxu1 %vm209_vm3, %v228_v37 }
 0x256   :  { %v412_v38 = vpop.eup %411 }
 0x257   :  { %v225_v39 = vsel %vm209_vm3, %v412_v38, 0.0  ;;  %v229_v40 = vpack.c.bf16 %v412_v38, %v412_v38 }
 0x258   :  { %226 = vadd.xlane.f32.xlu1 %v225_v39 }
 0x259   :  { %394 = vmatmul.mubr.msk.bf16.vlgmr.msra.gmra.mxu0 %vm209_vm3, %v229_v40 }
 0x2dd   :  { %v224_v41 = vpop.xlane.xlu1 %223 }
 0x2de   :  { %413 = vrcp.f32 %v224_v41 }
 0x2e1   :  { %v227_v42 = vpop.xlane.xlu1 %226 }
 0x2e2   :  { %415 = vrcp.f32 %v227_v42 }
 0x2eb   :  { %v414_v43 = vpop.eup %413 }
 0x2ef   :  { %v416_v47 = vpop.eup %415 }
 0x315   :  { %v270_v44 = vpop.f32.mrf.mxu1 }
 0x316   :  { %v323_v45 = vmul.f32 %v414_v43, %v270_v44 }
 0x317   :  { %v389_v46 = vpop.f32.mrf.mxu1 }
 0x318   :  { %325 = vst.msk [vmem:[#allocation7] sm:$0xff] %vm74_vm1, %v323_v45 }
 0x319   :  { %v273_v48 = vpop.f32.mrf.mxu1  ;;  %v315_v49 = vpop.f32.mrf.mxu0 }
 0x31a   :  { %v324_v50 = vmul.f32 %v416_v47, %v315_v49 }
 0x31b   :  { %v390_v51 = vpop.f32.mrf.mxu1  ;;  %v395_v52 = vpop.f32.mrf.mxu0 }
 0x31c   :  { %326 = vst.msk [vmem:[#allocation7 + $0x8] sm:$0xff] %vm74_vm1, %v324_v50 }
 0x31d   :  { %v318_v53 = vpop.f32.mrf.mxu0 }
 0x31e   :  { %468 = shalt.err (!%p465_p0)
}
 0x31f   :  { %s490_s26 = smov 128   ;;  %s491_s27 = smov 8   ;;  %v396_v54 = vpop.f32.mrf.mxu0 }
 0x320   :  { %338 = dma.vmem_to_hbm [thread:$0]  %s333_s24, 256, %s545_s3, [#allocation4], %s490_s26, %s490_s26, %s491_s27  }
 0x321   :  { %481 = dma.done.wait [#allocation4], 256  }
 0x322   :  { %482 = vsyncadd [#allocation4], 4294967040 }
 0x323   :  { %342 = vsyncpa [#allocation3], 1 }
 0x324   :  { %343 = vsyncpa [#allocation6], 1 }
 0x325   :  { %344 = vsyncpa [#allocation4], 1 }

</bundles_post_ra>
